<compile_context>
chip_gen: v7x
topology: tpu7x:2x2x1
jax: 0.10.0
libtpu: 0.0.40
codegen_flags: <defaults>
</compile_context>

<pallas_src>
import functools

import jax
import jax.numpy as jnp
from jax.experimental import pallas as pl
from jax.experimental.pallas import tpu as pltpu


def _round_up(x, m):
    return ((x + m - 1) // m) * m


def _make_kernel(C, R):
    """Kernel over packed rows.  x tile: (TB, R*D); w1 packed block-diag: (R*D, R*C)."""

    def kernel(x_ref, w1_ref, b1_ref, w2_ref, b2_ref, out_ref, bott_ref):
        # fc1 on the MXU: (TB, R*D) @ (R*D, R*C) -> (TB, R*C), f32 accumulation.
        h = jnp.dot(x_ref[...], w1_ref[...], preferred_element_type=jnp.float32)
        # bias + ReLU on the VPU.
        h = jnp.maximum(h + b1_ref[...].astype(jnp.float32), 0.0)
        bott_ref[...] = h.astype(bott_ref.dtype)

        # fc2 on the VPU: for each packed sub-row r, out[:, r] = sum_c h[:, r*C+c] * w2[c] + b2.
        # C and R are tiny and static, so this is a handful of co-issued VALU ops instead of an
        # MXU push/pop round-trip.
        b2 = b2_ref[0]
        for r in range(R):
            acc = h[:, r * C:r * C + 1] * w2_ref[0]
            for c in range(1, C):
                acc = acc + h[:, r * C + c:r * C + c + 1] * w2_ref[c]
            out_ref[:, r:r + 1] = (acc + b2).astype(out_ref.dtype)

    return kernel


@functools.partial(jax.jit, static_argnames=("block_b",))
def bottleneck_forward(x, w1, b1, w2, b2, *, block_b=4096):
    """x: (B, input_size). Returns (out (B, 1), bottleneck (B, compress_layer)).

    block_b: max logical rows per grid step.  Large tiles amortize per-grid-step overhead; the
    batch axis is pipelined / double-buffered by BlockSpec and marked "parallel".
    """
    B, D = x.shape
    C = w1.shape[1]

    # 2-row lane packing (free, contiguous reshapes) when the batch is even.
    R = 2 if (B % 2 == 0 and 2 * D <= 512) else 1
    Bp, Dp, Cp = B // R, R * D, R * C

    x_p = x.reshape(Bp, Dp)                                           # free reshape
    w1_p = w1 if R == 1 else jnp.kron(jnp.eye(R, dtype=w1.dtype), w1)  # block-diag (Dp, Cp)
    b1_p = (b1 if R == 1 else jnp.tile(b1, R)).reshape(1, Cp)
    w2_s = w2.reshape(C)                                               # SMEM scalars
    b2_s = b2.reshape(1)                                               # SMEM scalar

    # Packed-row tile size.
    cap = _round_up(max(block_b // R, 8), 8)
    if Bp > cap:
        TB = cap                                  # multiple grid steps, pipelined
    elif Bp >= 1024:
        TB = _round_up(pl.cdiv(Bp, 2), 8)         # keep >= 2 steps so both v7x cores get work
    else:
        TB = Bp                                   # single block covering the full batch dim
    grid = (pl.cdiv(Bp, TB),)

    kernel = _make_kernel(C=C, R=R)
    out_p, bott_p = pl.pallas_call(
        kernel,
        grid=grid,
        out_shape=(
            jax.ShapeDtypeStruct((Bp, R), x.dtype),
            jax.ShapeDtypeStruct((Bp, Cp), x.dtype),
        ),
        in_specs=[
            pl.BlockSpec((TB, Dp), lambda i: (i, 0)),                 # x tile (pipelined)
            pl.BlockSpec((Dp, Cp), lambda i: (0, 0)),                 # packed w1, resident
            pl.BlockSpec((1, Cp), lambda i: (0, 0)),                  # packed b1, resident
            pl.BlockSpec(memory_space=pltpu.MemorySpace.SMEM),        # w2 scalars
            pl.BlockSpec(memory_space=pltpu.MemorySpace.SMEM),        # b2 scalar
        ],
        out_specs=(
            pl.BlockSpec((TB, R), lambda i: (i, 0)),                  # packed out
            pl.BlockSpec((TB, Cp), lambda i: (i, 0)),                 # packed bottleneck
        ),
        compiler_params=pltpu.CompilerParams(
            dimension_semantics=("parallel",),
            vmem_limit_bytes=32 * 1024 * 1024,
        ),
    )(x_p, w1_p, b1_p, w2_s, b2_s)

    out = out_p.reshape(B, 1)        # free reshape: row-major (Bp, R) <-> (B, 1)
    bott = bott_p.reshape(B, C)      # free reshape: row-major (Bp, R*C) <-> (B, C)
    return out, bott


def init_params(key, input_size=64, compress_layer=2, dtype=jnp.float32):
    """Deterministic init mimicking nn.Linear's uniform(-1/sqrt(fan_in), 1/sqrt(fan_in))."""
    k1, k2, k3, k4 = jax.random.split(key, 4)
    bound1 = 1.0 / (input_size ** 0.5)
    bound2 = 1.0 / (compress_layer ** 0.5)
    w1 = jax.random.uniform(k1, (input_size, compress_layer), dtype, -bound1, bound1)
    b1 = jax.random.uniform(k2, (compress_layer,), dtype, -bound1, bound1)
    w2 = jax.random.uniform(k3, (compress_layer, 1), dtype, -bound2, bound2)
    b2 = jax.random.uniform(k4, (1,), dtype, -bound2, bound2)
    return w1, b1, w2, b2


def _reference(x, w1, b1, w2, b2):
    bott = jnp.maximum(x @ w1 + b1, 0.0)
    return bott @ w2 + b2, bott


if __name__ == "__main__":
    key = jax.random.PRNGKey(0)
    kx1, kx2, kx3, kp = jax.random.split(key, 4)

    input_size, compress_layer = 64, 2
    w1, b1, w2, b2 = init_params(kp, input_size=input_size, compress_layer=compress_layer)

    # Case 1: even batch (2-row packed path), single block.
    b1_n = 16
    x1 = jax.random.normal(kx1, (b1_n, input_size), jnp.float32)
    out1, bott1 = bottleneck_forward(x1, w1, b1, w2, b2)
    jax.block_until_ready((out1, bott1))
    ref_out1, ref_bott1 = _reference(x1, w1, b1, w2, b2)
    assert out1.shape == (b1_n, 1) and bott1.shape == (b1_n, compress_layer)
    assert jnp.allclose(out1, ref_out1, atol=2e-5, rtol=1e-5)
    assert jnp.allclose(bott1, ref_bott1, atol=2e-5, rtol=1e-5)

    # Case 2: even batch with a tiny block_b -> multi-step grid with a partial last block
    # (exercises the no-pad / masked-write path).
    b2_n = 20
    x2 = jax.random.normal(kx2, (b2_n, input_size), jnp.float32)
    out2, bott2 = bottleneck_forward(x2, w1, b1, w2, b2, block_b=8)
    jax.block_until_ready((out2, bott2))
    ref_out2, ref_bott2 = _reference(x2, w1, b1, w2, b2)
    assert jnp.allclose(out2, ref_out2, atol=2e-5, rtol=1e-5)
    assert jnp.allclose(bott2, ref_bott2, atol=2e-5, rtol=1e-5)

    # Case 3: odd batch (unpacked R=1 fallback path).
    b3_n = 21
    x3 = jax.random.normal(kx3, (b3_n, input_size), jnp.float32)
    out3, bott3 = bottleneck_forward(x3, w1, b1, w2, b2)
    jax.block_until_ready((out3, bott3))
    ref_out3, ref_bott3 = _reference(x3, w1, b1, w2, b2)
    assert jnp.allclose(out3, ref_out3, atol=2e-5, rtol=1e-5)
    assert jnp.allclose(bott3, ref_bott3, atol=2e-5, rtol=1e-5)

    print("KERNEL_OK")
</pallas_src>

<mosaic_0001>
module attributes {stable_mosaic.version = 11 : i64} {
  func.func @kernel(%arg0: i32, %arg1: memref<8x128xf32, #tpu.memory_space<vmem>>, %arg2: memref<128x4xf32, #tpu.memory_space<vmem>>, %arg3: memref<1x4xf32, #tpu.memory_space<vmem>>, %arg4: memref<2xf32, #tpu.memory_space<smem>>, %arg5: memref<1xf32, #tpu.memory_space<smem>>, %arg6: memref<8x2xf32, #tpu.memory_space<vmem>>, %arg7: memref<8x4xf32, #tpu.memory_space<vmem>>) attributes {dimension_semantics = [#tpu.dimension_semantics<parallel>], iteration_bounds = array<i64: 1>, scalar_prefetch = 0 : i64, scratch_operands = 0 : i64, tpu.core_type = #tpu.core_type<tc>, window_params = [{transform_indices = @transform_0, window_bounds = array<i64: 8, 128>}, {pipeline_mode = #tpu.pipeline_mode<synchronous>, transform_indices = @transform_1, window_bounds = array<i64: 128, 4>}, {pipeline_mode = #tpu.pipeline_mode<synchronous>, transform_indices = @transform_2, window_bounds = array<i64: 1, 4>}, {transform_indices = @transform_3, window_bounds = array<i64: 2>}, {transform_indices = @transform_4, window_bounds = array<i64: 1>}, {transform_indices = @transform_5, window_bounds = array<i64: 8, 2>}, {transform_indices = @transform_6, window_bounds = array<i64: 8, 4>}]} {
    %c0 = arith.constant 0 : index
    %c0_0 = arith.constant 0 : index
    %0 = vector.load %arg1[%c0, %c0_0] : memref<8x128xf32, #tpu.memory_space<vmem>>, vector<8x128xf32>
    %c0_1 = arith.constant 0 : index
    %c0_2 = arith.constant 0 : index
    %1 = vector.load %arg2[%c0_1, %c0_2] : memref<128x4xf32, #tpu.memory_space<vmem>>, vector<128x4xf32>
    %cst = arith.constant dense<0.000000e+00> : vector<8x4xf32>
    %2 = tpu.matmul %0, %1, %cst {dimension_numbers = #tpu.dot_dimension_numbers<[1], [0], [0], [1], [0, 0, 1, 1], [], []>} : vector<8x128xf32>, vector<128x4xf32>, vector<8x4xf32> -> vector<8x4xf32>
    %c0_3 = arith.constant 0 : index
    %c0_4 = arith.constant 0 : index
    %3 = vector.load %arg3[%c0_3, %c0_4] : memref<1x4xf32, #tpu.memory_space<vmem>>, vector<1x4xf32>
    %4 = vector.broadcast %3 : vector<1x4xf32> to vector<8x4xf32>
    %5 = arith.addf %2, %4 : vector<8x4xf32>
    %cst_5 = arith.constant 0.000000e+00 : f32
    %6 = vector.broadcast %cst_5 : f32 to vector<8x4xf32>
    %7 = arith.maximumf %5, %6 : vector<8x4xf32>
    %c0_6 = arith.constant 0 : index
    %c0_7 = arith.constant 0 : index
    %8 = vector.load %arg7[%c0_6, %c0_7] : memref<8x4xf32, #tpu.memory_space<vmem>>, vector<8x4xf32>
    tpu.vector_store %arg7[%c0_6, %c0_7], %7 {strides = array<i32>} : memref<8x4xf32, #tpu.memory_space<vmem>>, vector<8x4xf32>,
    %c0_8 = arith.constant 0 : index
    %9 = memref.load %arg5[%c0_8] : memref<1xf32, #tpu.memory_space<smem>>
    %10 = vector.extract_strided_slice %7 {offsets = [0, 0], sizes = [8, 1], strides = [1, 1]} : vector<8x4xf32> to vector<8x1xf32>
    %c0_9 = arith.constant 0 : index
    %11 = memref.load %arg4[%c0_9] : memref<2xf32, #tpu.memory_space<smem>>
    %12 = vector.broadcast %11 : f32 to vector<8x1xf32>
    %13 = arith.mulf %10, %12 : vector<8x1xf32>
    %14 = vector.extract_strided_slice %7 {offsets = [0, 1], sizes = [8, 1], strides = [1, 1]} : vector<8x4xf32> to vector<8x1xf32>
    %c1 = arith.constant 1 : index
    %15 = memref.load %arg4[%c1] : memref<2xf32, #tpu.memory_space<smem>>
    %16 = vector.broadcast %15 : f32 to vector<8x1xf32>
    %17 = arith.mulf %14, %16 : vector<8x1xf32>
    %18 = arith.addf %13, %17 : vector<8x1xf32>
    %19 = vector.broadcast %9 : f32 to vector<8x1xf32>
    %20 = arith.addf %18, %19 : vector<8x1xf32>
    %c0_10 = arith.constant 0 : index
    %c0_11 = arith.constant 0 : index
    %21 = vector.load %arg6[%c0_10, %c0_11] : memref<8x2xf32, #tpu.memory_space<vmem>>, vector<8x1xf32>
    tpu.vector_store %arg6[%c0_10, %c0_11], %20 {strides = array<i32>} : memref<8x2xf32, #tpu.memory_space<vmem>>, vector<8x1xf32>,
    %22 = vector.extract_strided_slice %7 {offsets = [0, 2], sizes = [8, 1], strides = [1, 1]} : vector<8x4xf32> to vector<8x1xf32>
    %c0_12 = arith.constant 0 : index
    %23 = memref.load %arg4[%c0_12] : memref<2xf32, #tpu.memory_space<smem>>
    %24 = vector.broadcast %23 : f32 to vector<8x1xf32>
    %25 = arith.mulf %22, %24 : vector<8x1xf32>
    %26 = vector.extract_strided_slice %7 {offsets = [0, 3], sizes = [8, 1], strides = [1, 1]} : vector<8x4xf32> to vector<8x1xf32>
    %c1_13 = arith.constant 1 : index
    %27 = memref.load %arg4[%c1_13] : memref<2xf32, #tpu.memory_space<smem>>
    %28 = vector.broadcast %27 : f32 to vector<8x1xf32>
    %29 = arith.mulf %26, %28 : vector<8x1xf32>
    %30 = arith.addf %25, %29 : vector<8x1xf32>
    %31 = vector.broadcast %9 : f32 to vector<8x1xf32>
    %32 = arith.addf %30, %31 : vector<8x1xf32>
    %c0_14 = arith.constant 0 : index
    %c1_15 = arith.constant 1 : index
    %33 = vector.load %arg6[%c0_14, %c1_15] : memref<8x2xf32, #tpu.memory_space<vmem>>, vector<8x1xf32>
    tpu.vector_store %arg6[%c0_14, %c1_15], %32 {strides = array<i32>} : memref<8x2xf32, #tpu.memory_space<vmem>>, vector<8x1xf32>,
    return
  }
  func.func @transform_0(%arg0: i32) -> (i32, i32) {
    %c0_i32 = arith.constant 0 : i32
    %c0_i32_0 = arith.constant 0 : i32
    return %arg0, %c0_i32 : i32, i32
  }
  func.func @transform_1(%arg0: i32) -> (i32, i32) {
    %c0_i32 = arith.constant 0 : i32
    %c0_i32_0 = arith.constant 0 : i32
    %c0_i32_1 = arith.constant 0 : i32
    return %c0_i32, %c0_i32_0 : i32, i32
  }
  func.func @transform_2(%arg0: i32) -> (i32, i32) {
    %c0_i32 = arith.constant 0 : i32
    %c0_i32_0 = arith.constant 0 : i32
    %c0_i32_1 = arith.constant 0 : i32
    return %c0_i32, %c0_i32_0 : i32, i32
  }
  func.func @transform_3(%arg0: i32) -> i32 {
    %c0_i32 = arith.constant 0 : i32
    %c0_i32_0 = arith.constant 0 : i32
    return %c0_i32 : i32
  }
  func.func @transform_4(%arg0: i32) -> i32 {
    %c0_i32 = arith.constant 0 : i32
    %c0_i32_0 = arith.constant 0 : i32
    return %c0_i32 : i32
  }
  func.func @transform_5(%arg0: i32) -> (i32, i32) {
    %c0_i32 = arith.constant 0 : i32
    %c0_i32_0 = arith.constant 0 : i32
    return %arg0, %c0_i32 : i32, i32
  }
  func.func @transform_6(%arg0: i32) -> (i32, i32) {
    %c0_i32 = arith.constant 0 : i32
    %c0_i32_0 = arith.constant 0 : i32
    return %arg0, %c0_i32 : i32, i32
  }
}

</mosaic_0001>

<bundles_post_ra>
// kernel: tile.9
= control target key start
LH: loop header
LB: loop body
LE: loop exit
PB: predicated region body
PF: predicated region fallthrough
CT: control target
= control target key end

     0   :  { %vm7_vm0 = vcmask 15360   ;;  %vm13_vm1 = vcmask 31760   ;;  %s39_s0 = inlined_call_operand.vmem [shape: f32[2,2], index: 0, kind: input, shape index: {}]   ;;  %s40_s1 = inlined_call_operand.vmem [shape: f32[1,4], index: 1, kind: output, shape index: {}]  }
   0x1   :  { %v4_v0 = vld [vmem:[%s39_s0] sm:$0x3]  ;;  %s22_s0 = smov 2  }
   0x2   :  { %5 = vst [vmem:[#allocation1] sm:$0x3] %v4_v0 }
   0x9   :  { %v10_v1 = vld [vmem:[#allocation1 + $0x1] sm:$0x1]   ;;  %v6_v2 = vld [vmem:[#allocation1] sm:$0x1]  }
   0xa   :  { %11 = vrot.lane.b32.xlu0 %v10_v1, %s22_s0  ;;  %8 = vst.msk [vmem:[#allocation0] sm:$0x1] %vm7_vm0, %v6_v2  }
  0x7c   :  { %v12_v3 = vpop.permute.xlu0 %11  }
  0x7d   :  { %14 = vst.msk [vmem:[#allocation0] sm:$0x1] %vm13_vm1, %v12_v3  }
  0x84   :  { %v18_v4 = vld [vmem:[#allocation0] sm:$0x1] }
  0x85   :  { %20 = vst [vmem:[%s40_s1] sm:$0x1] %v18_v4 }

// kernel: tile.8
= control target key start
LH: loop header
LB: loop body
LE: loop exit
PB: predicated region body
PF: predicated region fallthrough
CT: control target
= control target key end

     0   :  { %s22_s0 = inlined_call_operand.vmem [shape: f32[2], index: 0, kind: input, shape index: {}]   ;;  %s23_s1 = inlined_call_operand.vmem [shape: f32[2,2], index: 1, kind: output, shape index: {}]  }
   0x1   :  { %v4_v0 = vld [vmem:[%s22_s0] ss:$0 sm:$0xff] }
   0x2   :  { %5 = vst [vmem:[%s23_s1] sm:$0x3] %v4_v0 }

// kernel: bottleneck_forward.1
= control target key start
LH: loop header
LB: loop body
LE: loop exit
PB: predicated region body
PF: predicated region fallthrough
CT: control target
= control target key end

     0   :  { %13 = vsyncpa [#allocation4], 0  ;;  %s383_s0 = inlined_call_operand.vmem [shape: f32[8,128], index: 0, kind: input, shape index: {}]   ;;  %s384_s1 = inlined_call_operand.vmem [shape: f32[128,4], index: 1, kind: input, shape index: {}]   ;;  %s385_s2 = inlined_call_operand.vmem [shape: f32[1,4], index: 2, kind: input, shape index: {}]   ;;  %s386_s3 = inlined_call_operand.vmem [shape: f32[2], index: 3, kind: input, shape index: {}]   ;;  %s387_s4 = inlined_call_operand.<no memory space> [shape: f32[1], index: 4, kind: input, shape index: {}]   ;;  %s388_s5 = inlined_call_operand.vmem [shape: f32[8,2], index: 5, kind: output, shape index: {0}]   ;;  %s389_s6 = inlined_call_operand.vmem [shape: f32[8,4], index: 6, kind: output, shape index: {1}]  }
   0x1   :  { %s26_s23 = sshll.u32 %s386_s3, 4  ;;  %s27_s23 = int_to_ptr.vmem [resolvable:$true] %s26_s23 }
   0x2   :  { %s260_s24 = scalar_lea.vmem %s27_s23, 16  ;;  %p265_p1 = scmp.lt.s32.totalorder %s27_s23, %s27_s23 }
   0x3   :  { %p261_p0 = scmp.ne.s32.totalorder %s27_s23, %s260_s24  ;;  %p266_p2 = scmp.lt.s32.totalorder %s260_s24, %s260_s24 }
   0x5   :  { %p267_p3 = por %p266_p2, %p265_p1 }
   0x7   :  { %p268_p4 = pnand %p267_p3, %p261_p0 }
   0x9   :  { %271 = shalt.err (!%p268_p4)
}
   0xa   :  { %s274_s25 = smov [#allocation3]  }
   0xb   :  { %29 = dma.vmem_to_smem %s27_s23, 16, %s274_s25, [#allocation4]  }
   0xc   :  { %272 = dma.done.wait [#allocation4], 16  }
   0xd   :  { %273 = vsyncadd [#allocation4], 4294967280 }
   0xe   :  { %35 = sfence }
   0xf   :  { %v37_v0 = vld [vmem:[%s384_s1] sm:$0xff]  ;;  %v38_v1 = vld [vmem:[%s384_s1 + $0x8] sm:$0xff]  ;;  %v39_v2 = vld [vmem:[%s384_s1 + $0x10] sm:$0xff]  ;;  %v275_v3 = vmov 0.0|0.0   ;;  %vm276_vm0 = vmmov 0   ;;  %v277_v6 = vmov 0.0   ;;  %v145_v37 = vstv %s387_s4 }
  0x10   :  { %231 = vmatprep.subr.bf16.mxu0 %v275_v3  ;;  %v232_v4 = vpack.c.bf16 %v38_v1, %v37_v0  ;;  %v40_v5 = vld [vmem:[%s384_s1 + $0x18] sm:$0xff]  ;;  %228 = vmatprep.mubr.msk.f32.mxu0 %vm276_vm0, %v277_v6  ;;  %v41_v8 = vld [vmem:[%s384_s1 + $0x20] sm:$0xff]  ;;  %v42_v9 = vld [vmem:[%s384_s1 + $0x28] sm:$0xff]  ;;  %s178_s10 = sld [smem:[#allocation3 + $0x1]]  ;;  %vm131_vm1 = vcmask 31744   ;;  %s278_s14 = smov 127  }
  0x11   :  { %v235_v7 = vpack.c.bf16 %v40_v5, %v39_v2  ;;  %v238_v10 = vpack.c.bf16 %v42_v9, %v41_v8  ;;  %v43_v11 = vld [vmem:[%s384_s1 + $0x30] sm:$0xff]  ;;  %v44_v12 = vld [vmem:[%s384_s1 + $0x38] sm:$0xff]  ;;  %v45_v14 = vld [vmem:[%s384_s1 + $0x40] sm:$0xff]  ;;  %vm147_vm2 = vcmask 7168   ;;  %vm165_vm3 = vcmask 15368  }
  0x12   :  { %233 = vmatpush3.bf16.msra.mxu0 %v232_v4  ;;  %v241_v13 = vpack.c.bf16 %v44_v12, %v43_v11  ;;  %v46_v15 = vld [vmem:[%s384_s1 + $0x48] sm:$0xff]  ;;  %v47_v17 = vld [vmem:[%s384_s1 + $0x50] sm:$0xff]  ;;  %v48_v18 = vld [vmem:[%s384_s1 + $0x58] sm:$0xff] }
  0x13   :  { %234 = vmatprep.subr.bf16.mxu0 %v275_v3  ;;  %v244_v16 = vpack.c.bf16 %v46_v15, %v45_v14  ;;  %v247_v19 = vpack.c.bf16 %v48_v18, %v47_v17  ;;  %v49_v20 = vld [vmem:[%s384_s1 + $0x60] sm:$0xff]  ;;  %v50_v21 = vld [vmem:[%s384_s1 + $0x68] sm:$0xff]  ;;  %v51_v23 = vld [vmem:[%s384_s1 + $0x70] sm:$0xff] }
  0x14   :  { %v250_v22 = vpack.c.bf16 %v50_v21, %v49_v20  ;;  %v52_v24 = vld [vmem:[%s384_s1 + $0x78] sm:$0xff]  ;;  %v36_v26 = vld [vmem:[%s383_s0] sm:$0xff]  ;;  %s149_s0 = sld [smem:[#allocation3]] }
  0x15   :  { %v253_v25 = vpack.c.bf16 %v52_v24, %v51_v23  ;;  %v176_v27 = vld [vmem:[%s385_s2] ss:$0 sm:$0xff] }
  0x16   :  { %236 = vmatpush3.bf16.msra.mxu0 %v235_v7  ;;  %v153_v31 = vstv %s178_s10 }
  0x17   :  { %237 = vmatprep.subr.bf16.mxu0 %v275_v3 }
  0x1a   :  { %239 = vmatpush3.bf16.msra.mxu0 %v238_v10  ;;  %v150_v34 = vstv %s149_s0 }
  0x1b   :  { %240 = vmatprep.subr.bf16.mxu0 %v275_v3 }
  0x1e   :  { %242 = vmatpush3.bf16.msra.mxu0 %v241_v13 }
  0x1f   :  { %243 = vmatprep.subr.bf16.mxu0 %v275_v3 }
  0x22   :  { %245 = vmatpush3.bf16.msra.mxu0 %v244_v16 }
  0x23   :  { %246 = vmatprep.subr.bf16.mxu0 %v275_v3 }
  0x26   :  { %248 = vmatpush3.bf16.msra.mxu0 %v247_v19 }
  0x27   :  { %249 = vmatprep.subr.bf16.mxu0 %v275_v3 }
  0x2a   :  { %251 = vmatpush3.bf16.msra.mxu0 %v250_v22 }
  0x2b   :  { %252 = vmatprep.subr.bf16.mxu0 %v275_v3 }
  0x2e   :  { %254 = vmatpush3.bf16.msra.mxu0 %v253_v25 }
  0x31   :  { %229 = vmatmul.mubr.f32.vlgmr.msra.gmra.mrb[0].mxu0 %v36_v26 }
 0x104   :  { %v126_v28 = vpop.f32.mrb[0].mxu0 }
 0x105   :  { %v127_v29 = vadd.f32 %v176_v27, %v126_v28  ;;  %v230_v30 = vpop.f32.mrb[1].mxu0 }
 0x107   :  { %v130_v32 = vmax.f32 %v127_v29, 0.0 }
 0x109   :  { %132 = vst.msk [vmem:[%s389_s6] sm:$0xff] %vm131_vm1, %v130_v32  ;;  %v154_v33 = vmul.f32 %v153_v31, %v130_v32  ;;  %v151_v35 = vmul.f32 %v150_v34, %v130_v32 }
 0x10b   :  { %156 = vrot.lane.b32.xlu0 %v154_v33, %s278_s14 }
 0x10f   :  { %141 = vrot.lane.b32.xlu0 %v154_v33, %s278_s14 }
 0x17d   :  { %v157_v36 = vpop.permute.xlu0 %156 }
 0x17e   :  { %v159_v38 = vadd.f32 %v157_v36, %v151_v35 }
 0x180   :  { %v160_v39 = vadd.f32 %v159_v38, %v145_v37 }
 0x181   :  { %v142_v40 = vpop.permute.xlu0 %141 }
 0x182   :  { %v144_v41 = vadd.f32 %v151_v35, %v142_v40  ;;  %162 = vrot.lane.b32.xlu1 %v160_v39, %s278_s14 }
 0x184   :  { %v146_v42 = vadd.f32 %v145_v37, %v144_v41 }
 0x186   :  { %148 = vst.msk [vmem:[%s388_s5] sm:$0xff] %vm147_vm2, %v146_v42 }
 0x1f4   :  { %v163_v43 = vpop.permute.xlu1 %162 }
 0x1f5   :  { %166 = vst.msk [vmem:[%s388_s5] sm:$0xff] %vm165_vm3, %v163_v43 }
 0x1f6   :  { %175 = vsyncpa [#allocation4], 1 }

</bundles_post_ra>
